<compile_context>
chip_gen: v7x
topology: tpu7x:2x2x1
jax: 0.10.0
libtpu: 0.0.40
codegen_flags: <defaults>
</compile_context>

<pallas_src>
import jax
import jax.numpy as jnp
from jax.experimental import pallas as pl
from jax.experimental.pallas import tpu as pltpu

LANE = 128
SUBLANE = 8


def _round_up(x, m):
    return ((x + m - 1) // m) * m


def actor_kernel(s_ref, w1_ref, w2_ref, w3_ref, b12_ref, b3_ref, o_ref):
    # layer 1: relu(s @ W1 + b1)   (zero-padded columns stay exactly 0)
    h = jnp.dot(s_ref[...], w1_ref[...], preferred_element_type=jnp.float32)
    h = jnp.maximum(h + b12_ref[0:1, :], 0.0)
    # layer 2: relu(h @ W2 + b2)
    h = jnp.dot(h, w2_ref[...], preferred_element_type=jnp.float32)
    h = jnp.maximum(h + b12_ref[1:2, :], 0.0)
    # layer 3: tanh(h @ W3 + b3)  -> lane-dense (tile_b, a_pad) store
    a = jnp.dot(h, w3_ref[...], preferred_element_type=jnp.float32)
    o_ref[...] = jnp.tanh(a + b3_ref[...]).astype(o_ref.dtype)


def _actor_forward(s, w1, b1, w2, b2, w3, b3, *, tile_b=512):
    B, state_dim = s.shape
    hidden = w1.shape[1]
    action_dim = w3.shape[1]

    # independent lane-aligned paddings: hidden activations live only in
    # VMEM/vregs, the action width controls the HBM writeback volume.
    h_pad = _round_up(hidden, LANE)
    a_pad = _round_up(action_dim, LANE)

    # zero-padded parameters; kernel runs entirely at padded widths with no
    # in-kernel slicing. b1/b2 are packed into one (2, h_pad) array.
    w1p = jnp.zeros((state_dim, h_pad), jnp.float32).at[:, :hidden].set(w1)
    w2p = jnp.zeros((h_pad, h_pad), jnp.float32).at[:hidden, :hidden].set(w2)
    w3p = jnp.zeros((h_pad, a_pad), jnp.float32).at[:hidden, :action_dim].set(w3)
    b12p = (
        jnp.zeros((2, h_pad), jnp.float32)
        .at[0, :hidden].set(b1)
        .at[1, :hidden].set(b2)
    )
    b3p = jnp.zeros((1, a_pad), jnp.float32).at[0, :action_dim].set(b3)

    # batch tiling: tile_b rows per grid step (double-buffered blocks stay far
    # below even v7x's 32 MiB scoped-VMEM default); weights stay resident.
    tb = min(tile_b, _round_up(B, SUBLANE))
    tb = _round_up(tb, SUBLANE)
    b_pad = _round_up(B, tb)
    if b_pad != B:
        s = jnp.pad(s, ((0, b_pad - B), (0, 0)))
    grid = (b_pad // tb,)

    out = pl.pallas_call(
        actor_kernel,
        out_shape=jax.ShapeDtypeStruct((b_pad, a_pad), jnp.float32),
        grid=grid,
        in_specs=[
            pl.BlockSpec((tb, state_dim), lambda i: (i, 0)),      # streamed per step
            pl.BlockSpec((state_dim, h_pad), lambda i: (0, 0)),   # resident
            pl.BlockSpec((h_pad, h_pad), lambda i: (0, 0)),       # resident
            pl.BlockSpec((h_pad, a_pad), lambda i: (0, 0)),       # resident
            pl.BlockSpec((2, h_pad), lambda i: (0, 0)),           # resident
            pl.BlockSpec((1, a_pad), lambda i: (0, 0)),           # resident
        ],
        out_specs=pl.BlockSpec((tb, a_pad), lambda i: (i, 0)),
        compiler_params=pltpu.CompilerParams(
            dimension_semantics=("parallel",),
        ),
    )(s, w1p, w2p, w3p, b12p, b3p)

    return out[:B, :action_dim]


actor_forward = jax.jit(_actor_forward, static_argnames=("tile_b",))


def init_params(key, state_dim, action_dim, hidden_width):
    # deterministic init mimicking nn.Linear's U(-1/sqrt(fan_in), 1/sqrt(fan_in));
    # weights stored transposed as (in_features, out_features).
    ks = jax.random.split(key, 6)

    def linear(kw, kb, fan_in, fan_out):
        bound = 1.0 / jnp.sqrt(jnp.float32(fan_in))
        w = jax.random.uniform(kw, (fan_in, fan_out), jnp.float32, -bound, bound)
        b = jax.random.uniform(kb, (fan_out,), jnp.float32, -bound, bound)
        return w, b

    w1, b1 = linear(ks[0], ks[1], state_dim, hidden_width)
    w2, b2 = linear(ks[2], ks[3], hidden_width, hidden_width)
    w3, b3 = linear(ks[4], ks[5], hidden_width, action_dim)
    return w1, b1, w2, b2, w3, b3


if __name__ == "__main__":
    batch = 8
    state_dim = 16
    action_dim = 8
    hidden_width = 32

    key = jax.random.PRNGKey(0)
    k_in, k_params = jax.random.split(key)

    s = jax.random.normal(k_in, (batch, state_dim), jnp.float32)
    w1, b1, w2, b2, w3, b3 = init_params(k_params, state_dim, action_dim, hidden_width)

    a = actor_forward(s, w1, b1, w2, b2, w3, b3)
    a = jax.block_until_ready(a)

    # sanity check against pure-JAX reference
    h1 = jnp.maximum(s @ w1 + b1, 0.0)
    h2 = jnp.maximum(h1 @ w2 + b2, 0.0)
    a_ref = jnp.tanh(h2 @ w3 + b3)
    assert a.shape == (batch, action_dim)
    assert jnp.allclose(a, a_ref, atol=1e-5), "mismatch vs reference"

    print("KERNEL_OK")
</pallas_src>

<mosaic_0001>
module attributes {stable_mosaic.version = 11 : i64} {
  func.func @actor_kernel(%arg0: i32, %arg1: memref<8x16xf32, #tpu.memory_space<vmem>>, %arg2: memref<16x128xf32, #tpu.memory_space<vmem>>, %arg3: memref<128x128xf32, #tpu.memory_space<vmem>>, %arg4: memref<128x128xf32, #tpu.memory_space<vmem>>, %arg5: memref<2x128xf32, #tpu.memory_space<vmem>>, %arg6: memref<1x128xf32, #tpu.memory_space<vmem>>, %arg7: memref<8x128xf32, #tpu.memory_space<vmem>>) attributes {dimension_semantics = [#tpu.dimension_semantics<parallel>], iteration_bounds = array<i64: 1>, scalar_prefetch = 0 : i64, scratch_operands = 0 : i64, tpu.core_type = #tpu.core_type<tc>, window_params = [{transform_indices = @transform_0, window_bounds = array<i64: 8, 16>}, {pipeline_mode = #tpu.pipeline_mode<synchronous>, transform_indices = @transform_1, window_bounds = array<i64: 16, 128>}, {pipeline_mode = #tpu.pipeline_mode<synchronous>, transform_indices = @transform_2, window_bounds = array<i64: 128, 128>}, {pipeline_mode = #tpu.pipeline_mode<synchronous>, transform_indices = @transform_3, window_bounds = array<i64: 128, 128>}, {pipeline_mode = #tpu.pipeline_mode<synchronous>, transform_indices = @transform_4, window_bounds = array<i64: 2, 128>}, {pipeline_mode = #tpu.pipeline_mode<synchronous>, transform_indices = @transform_5, window_bounds = array<i64: 1, 128>}, {transform_indices = @transform_6, window_bounds = array<i64: 8, 128>}]} {
    %c0 = arith.constant 0 : index
    %c0_0 = arith.constant 0 : index
    %0 = vector.load %arg1[%c0, %c0_0] : memref<8x16xf32, #tpu.memory_space<vmem>>, vector<8x16xf32>
    %c0_1 = arith.constant 0 : index
    %c0_2 = arith.constant 0 : index
    %1 = vector.load %arg2[%c0_1, %c0_2] : memref<16x128xf32, #tpu.memory_space<vmem>>, vector<16x128xf32>
    %cst = arith.constant dense<0.000000e+00> : vector<8x128xf32>
    %2 = tpu.matmul %0, %1, %cst {dimension_numbers = #tpu.dot_dimension_numbers<[1], [0], [0], [1], [0, 0, 1, 1], [], []>} : vector<8x16xf32>, vector<16x128xf32>, vector<8x128xf32> -> vector<8x128xf32>
    %c0_3 = arith.constant 0 : index
    %c0_4 = arith.constant 0 : index
    %3 = vector.load %arg5[%c0_3, %c0_4] : memref<2x128xf32, #tpu.memory_space<vmem>>, vector<1x128xf32>
    %4 = vector.broadcast %3 : vector<1x128xf32> to vector<8x128xf32>
    %5 = arith.addf %2, %4 : vector<8x128xf32>
    %cst_5 = arith.constant 0.000000e+00 : f32
    %6 = vector.broadcast %cst_5 : f32 to vector<8x128xf32>
    %7 = arith.maximumf %5, %6 : vector<8x128xf32>
    %c0_6 = arith.constant 0 : index
    %c0_7 = arith.constant 0 : index
    %8 = vector.load %arg3[%c0_6, %c0_7] : memref<128x128xf32, #tpu.memory_space<vmem>>, vector<128x128xf32>
    %cst_8 = arith.constant dense<0.000000e+00> : vector<8x128xf32>
    %9 = tpu.matmul %7, %8, %cst_8 {dimension_numbers = #tpu.dot_dimension_numbers<[1], [0], [0], [1], [0, 0, 1, 1], [], []>} : vector<8x128xf32>, vector<128x128xf32>, vector<8x128xf32> -> vector<8x128xf32>
    %c1 = arith.constant 1 : index
    %c0_9 = arith.constant 0 : index
    %10 = vector.load %arg5[%c1, %c0_9] : memref<2x128xf32, #tpu.memory_space<vmem>>, vector<1x128xf32>
    %11 = vector.broadcast %10 : vector<1x128xf32> to vector<8x128xf32>
    %12 = arith.addf %9, %11 : vector<8x128xf32>
    %cst_10 = arith.constant 0.000000e+00 : f32
    %13 = vector.broadcast %cst_10 : f32 to vector<8x128xf32>
    %14 = arith.maximumf %12, %13 : vector<8x128xf32>
    %c0_11 = arith.constant 0 : index
    %c0_12 = arith.constant 0 : index
    %15 = vector.load %arg4[%c0_11, %c0_12] : memref<128x128xf32, #tpu.memory_space<vmem>>, vector<128x128xf32>
    %cst_13 = arith.constant dense<0.000000e+00> : vector<8x128xf32>
    %16 = tpu.matmul %14, %15, %cst_13 {dimension_numbers = #tpu.dot_dimension_numbers<[1], [0], [0], [1], [0, 0, 1, 1], [], []>} : vector<8x128xf32>, vector<128x128xf32>, vector<8x128xf32> -> vector<8x128xf32>
    %c0_14 = arith.constant 0 : index
    %c0_15 = arith.constant 0 : index
    %17 = vector.load %arg6[%c0_14, %c0_15] : memref<1x128xf32, #tpu.memory_space<vmem>>, vector<1x128xf32>
    %18 = vector.broadcast %17 : vector<1x128xf32> to vector<8x128xf32>
    %19 = arith.addf %16, %18 : vector<8x128xf32>
    %20 = math.tanh %19 : vector<8x128xf32>
    %c0_16 = arith.constant 0 : index
    %c0_17 = arith.constant 0 : index
    %21 = vector.load %arg7[%c0_16, %c0_17] : memref<8x128xf32, #tpu.memory_space<vmem>>, vector<8x128xf32>
    tpu.vector_store %arg7[%c0_16, %c0_17], %20 {strides = array<i32>} : memref<8x128xf32, #tpu.memory_space<vmem>>, vector<8x128xf32>,
    return
  }
  func.func @transform_0(%arg0: i32) -> (i32, i32) {
    %c0_i32 = arith.constant 0 : i32
    %c0_i32_0 = arith.constant 0 : i32
    return %arg0, %c0_i32 : i32, i32
  }
  func.func @transform_1(%arg0: i32) -> (i32, i32) {
    %c0_i32 = arith.constant 0 : i32
    %c0_i32_0 = arith.constant 0 : i32
    %c0_i32_1 = arith.constant 0 : i32
    return %c0_i32, %c0_i32_0 : i32, i32
  }
  func.func @transform_2(%arg0: i32) -> (i32, i32) {
    %c0_i32 = arith.constant 0 : i32
    %c0_i32_0 = arith.constant 0 : i32
    %c0_i32_1 = arith.constant 0 : i32
    return %c0_i32, %c0_i32_0 : i32, i32
  }
  func.func @transform_3(%arg0: i32) -> (i32, i32) {
    %c0_i32 = arith.constant 0 : i32
    %c0_i32_0 = arith.constant 0 : i32
    %c0_i32_1 = arith.constant 0 : i32
    return %c0_i32, %c0_i32_0 : i32, i32
  }
  func.func @transform_4(%arg0: i32) -> (i32, i32) {
    %c0_i32 = arith.constant 0 : i32
    %c0_i32_0 = arith.constant 0 : i32
    %c0_i32_1 = arith.constant 0 : i32
    return %c0_i32, %c0_i32_0 : i32, i32
  }
  func.func @transform_5(%arg0: i32) -> (i32, i32) {
    %c0_i32 = arith.constant 0 : i32
    %c0_i32_0 = arith.constant 0 : i32
    %c0_i32_1 = arith.constant 0 : i32
    return %c0_i32, %c0_i32_0 : i32, i32
  }
  func.func @transform_6(%arg0: i32) -> (i32, i32) {
    %c0_i32 = arith.constant 0 : i32
    %c0_i32_0 = arith.constant 0 : i32
    return %arg0, %c0_i32 : i32, i32
  }
}

</mosaic_0001>

<bundles_post_ra>
// kernel: _actor_forward.1
= control target key start
LH: loop header
LB: loop body
LE: loop exit
PB: predicated region body
PF: predicated region fallthrough
CT: control target
= control target key end

     0   :  { %v507_v2 = vmov 0.0|0.0   ;;  %vm508_vm0 = vmmov 0   ;;  %v509_v4 = vmov 0.0   ;;  %vm32_vm1 = vcmask 130048   ;;  %s692_s0 = inlined_call_operand.vmem [shape: f32[8,16], index: 0, kind: input, shape index: {}]   ;;  %s693_s1 = inlined_call_operand.vmem [shape: f32[16,128], index: 1, kind: input, shape index: {}]   ;;  %s694_s2 = inlined_call_operand.vmem [shape: f32[128,128], index: 2, kind: input, shape index: {}]   ;;  %s695_s3 = inlined_call_operand.vmem [shape: f32[128,128], index: 3, kind: input, shape index: {}]   ;;  %s696_s4 = inlined_call_operand.vmem [shape: f32[2,128], index: 4, kind: input, shape index: {}]   ;;  %s697_s5 = inlined_call_operand.vmem [shape: f32[1,128], index: 5, kind: input, shape index: {}]   ;;  %s698_s6 = inlined_call_operand.hbm [shape: f32[8,128], index: 6, kind: output, shape index: {}]  }
   0x1   :  { %v25_v0 = vld [vmem:[%s693_s1] sm:$0xff]  ;;  %v26_v1 = vld [vmem:[%s693_s1 + $0x8] sm:$0xff]  ;;  %426 = vmatprep.subr.bf16.mxu0 %v507_v2  ;;  %353 = vmatprep.mubr.msk.f32.mxu0 %vm508_vm0, %v509_v4  ;;  %v109_v7 = vld [vmem:[%s694_s2 + $0x10] sm:$0xff] }
   0x2   :  { %v427_v3 = vpack.c.bf16 %v26_v1, %v25_v0  ;;  %v107_v5 = vld [vmem:[%s694_s2] sm:$0xff]  ;;  %v108_v6 = vld [vmem:[%s694_s2 + $0x8] sm:$0xff]  ;;  %429 = vmatprep.subr.bf16.mxu1 %v507_v2  ;;  %v110_v9 = vld [vmem:[%s694_s2 + $0x18] sm:$0xff]  ;;  %388 = vmatprep.mubr.msk.f32.mxu1 %vm508_vm0, %v509_v4 }
   0x3   :  { %v430_v8 = vpack.c.bf16 %v108_v6, %v107_v5  ;;  %v24_v10 = vld [vmem:[%s692_s0] sm:$0xff]  ;;  %v433_v11 = vpack.c.bf16 %v110_v9, %v109_v7  ;;  %v112_v13 = vld [vmem:[%s694_s2 + $0x28] sm:$0xff] }
   0x4   :  { %428 = vmatpush3.bf16.msra.mxu0 %v427_v3  ;;  %v111_v12 = vld [vmem:[%s694_s2 + $0x20] sm:$0xff] }
   0x5   :  { %431 = vmatpush3.bf16.msra.mxu1 %v430_v8  ;;  %453 = vmatprep.subr.bf16.mxu0 %v507_v2 }
   0x6   :  { %432 = vmatprep.subr.bf16.mxu1 %v507_v2 }
   0x7   :  { %354 = vmatmul.mubr.msk.f32.vlgmr.msra.gmra.mrb[0].mxu0 %vm32_vm1, %v24_v10 }
   0x8   :  { %11 = vsyncpa [#allocation3], 0  ;;  %423 = vmatprep.mubr.msk.f32.mxu0 %vm508_vm0, %v509_v4  ;;  %v436_v14 = vpack.c.bf16 %v112_v13, %v111_v12  ;;  %v113_v15 = vld [vmem:[%s694_s2 + $0x30] sm:$0xff]  ;;  %v114_v16 = vld [vmem:[%s694_s2 + $0x38] sm:$0xff] }
   0x9   :  { %434 = vmatpush3.bf16.msra.mxu1 %v433_v11  ;;  %v439_v17 = vpack.c.bf16 %v114_v16, %v113_v15  ;;  %v115_v18 = vld [vmem:[%s694_s2 + $0x40] sm:$0xff]  ;;  %v116_v19 = vld [vmem:[%s694_s2 + $0x48] sm:$0xff]  ;;  %v117_v21 = vld [vmem:[%s694_s2 + $0x50] sm:$0xff] }
   0xa   :  { %435 = vmatprep.subr.bf16.mxu1 %v507_v2  ;;  %v442_v20 = vpack.c.bf16 %v116_v19, %v115_v18  ;;  %v118_v22 = vld [vmem:[%s694_s2 + $0x58] sm:$0xff]  ;;  %v119_v24 = vld [vmem:[%s694_s2 + $0x60] sm:$0xff]  ;;  %v120_v25 = vld [vmem:[%s694_s2 + $0x68] sm:$0xff] }
   0xb   :  { %v445_v23 = vpack.c.bf16 %v118_v22, %v117_v21  ;;  %v448_v26 = vpack.c.bf16 %v120_v25, %v119_v24  ;;  %v121_v27 = vld [vmem:[%s694_s2 + $0x70] sm:$0xff]  ;;  %v122_v28 = vld [vmem:[%s694_s2 + $0x78] sm:$0xff]  ;;  %v199_v30 = vld [vmem:[%s695_s3] sm:$0xff] }
   0xc   :  { %v451_v29 = vpack.c.bf16 %v122_v28, %v121_v27  ;;  %v200_v31 = vld [vmem:[%s695_s3 + $0x8] sm:$0xff]  ;;  %v201_v32 = vld [vmem:[%s695_s3 + $0x10] sm:$0xff]  ;;  %v202_v34 = vld [vmem:[%s695_s3 + $0x18] sm:$0xff] }
   0xd   :  { %437 = vmatpush3.bf16.msra.mxu1 %v436_v14  ;;  %v454_v33 = vpack.c.bf16 %v200_v31, %v199_v30  ;;  %v457_v35 = vpack.c.bf16 %v202_v34, %v201_v32  ;;  %v203_v36 = vld [vmem:[%s695_s3 + $0x20] sm:$0xff]  ;;  %v204_v37 = vld [vmem:[%s695_s3 + $0x28] sm:$0xff]  ;;  %v205_v39 = vld [vmem:[%s695_s3 + $0x30] sm:$0xff] }
   0xe   :  { %438 = vmatprep.subr.bf16.mxu1 %v507_v2  ;;  %v460_v38 = vpack.c.bf16 %v204_v37, %v203_v36  ;;  %v206_v40 = vld [vmem:[%s695_s3 + $0x38] sm:$0xff]  ;;  %v207_v42 = vld [vmem:[%s695_s3 + $0x40] sm:$0xff]  ;;  %v208_v43 = vld [vmem:[%s695_s3 + $0x48] sm:$0xff] }
   0xf   :  { %455 = vmatpush3.bf16.msra.mxu0 %v454_v33  ;;  %v463_v41 = vpack.c.bf16 %v206_v40, %v205_v39  ;;  %v466_v44 = vpack.c.bf16 %v208_v43, %v207_v42  ;;  %v209_v45 = vld [vmem:[%s695_s3 + $0x50] sm:$0xff]  ;;  %v210_v46 = vld [vmem:[%s695_s3 + $0x58] sm:$0xff]  ;;  %v211_v48 = vld [vmem:[%s695_s3 + $0x60] sm:$0xff] }
  0x10   :  { %456 = vmatprep.subr.bf16.mxu0 %v507_v2  ;;  %v469_v47 = vpack.c.bf16 %v210_v46, %v209_v45  ;;  %v212_v49 = vld [vmem:[%s695_s3 + $0x68] sm:$0xff]  ;;  %v308_v51 = vld [vmem:[%s696_s4] ss:$0 sm:$0xff]  ;;  %v213_v56 = vld [vmem:[%s695_s3 + $0x70] sm:$0xff] }
  0x11   :  { %440 = vmatpush3.bf16.msra.mxu1 %v439_v17  ;;  %v472_v50 = vpack.c.bf16 %v212_v49, %v211_v48  ;;  %v214_v57 = vld [vmem:[%s695_s3 + $0x78] sm:$0xff]  ;;  %v310_v59 = vld [vmem:[%s696_s4 + $0x1] ss:$0 sm:$0xff]  ;;  %v311_v0 = vld [vmem:[%s697_s5] ss:$0 sm:$0xff]  ;;  %s510_s3 = smov [#allocation2]  }
  0x12   :  { %441 = vmatprep.subr.bf16.mxu1 %v507_v2  ;;  %v475_v58 = vpack.c.bf16 %v214_v57, %v213_v56  ;;  %s300_s17 = sshll.u32 %s510_s3, 4  ;;  %s301_s17 = int_to_ptr.vmem [resolvable:$true] %s300_s17 }
  0x13   :  { %458 = vmatpush3.bf16.msra.mxu0 %v457_v35  ;;  %s483_s18 = scalar_lea.vmem %s301_s17, 128  ;;  %p488_p1 = scmp.lt.s32.totalorder %s301_s17, %s301_s17 }
  0x14   :  { %459 = vmatprep.subr.bf16.mxu0 %v507_v2  ;;  %p484_p0 = scmp.ne.s32.totalorder %s301_s17, %s483_s18  ;;  %p489_p2 = scmp.lt.s32.totalorder %s483_s18, %s483_s18 }
  0x15   :  { %443 = vmatpush3.bf16.msra.mxu1 %v442_v20 }
  0x16   :  { %444 = vmatprep.subr.bf16.mxu1 %v507_v2  ;;  %p490_p3 = por %p489_p2, %p488_p1 }
  0x17   :  { %461 = vmatpush3.bf16.msra.mxu0 %v460_v38 }
  0x18   :  { %462 = vmatprep.subr.bf16.mxu0 %v507_v2  ;;  %p491_p4 = pnand %p490_p3, %p484_p0 }
  0x19   :  { %446 = vmatpush3.bf16.msra.mxu1 %v445_v23 }
  0x1a   :  { %447 = vmatprep.subr.bf16.mxu1 %v507_v2 }
  0x1b   :  { %464 = vmatpush3.bf16.msra.mxu0 %v463_v41 }
  0x1c   :  { %465 = vmatprep.subr.bf16.mxu0 %v507_v2 }
  0x1d   :  { %449 = vmatpush3.bf16.msra.mxu1 %v448_v26 }
  0x1e   :  { %450 = vmatprep.subr.bf16.mxu1 %v507_v2 }
  0x1f   :  { %467 = vmatpush3.bf16.msra.mxu0 %v466_v44 }
  0x20   :  { %468 = vmatprep.subr.bf16.mxu0 %v507_v2 }
  0x21   :  { %452 = vmatpush3.bf16.msra.mxu1 %v451_v29 }
  0x23   :  { %470 = vmatpush3.bf16.msra.mxu0 %v469_v47 }
  0x24   :  { %471 = vmatprep.subr.bf16.mxu0 %v507_v2 }
  0x27   :  { %473 = vmatpush3.bf16.msra.mxu0 %v472_v50 }
  0x28   :  { %474 = vmatprep.subr.bf16.mxu0 %v507_v2 }
  0x2b   :  { %476 = vmatpush3.bf16.msra.mxu0 %v475_v58 }
  0xda   :  { %v102_v52 = vpop.f32.mrb[0].mxu0 }
  0xdb   :  { %v103_v53 = vadd.f32 %v308_v51, %v102_v52  ;;  %v355_v54 = vpop.f32.mrb[1].mxu0 }
  0xdd   :  { %v106_v55 = vmax.f32 %v103_v53, 0.0 }
  0xdf   :  { %389 = vmatmul.mubr.f32.vlgmr.msra.gmra.mrb[0].mxu1 %v106_v55 }
 0x1b2   :  { %v194_v60 = vpop.f32.mrb[0].mxu1 }
 0x1b3   :  { %v195_v61 = vadd.f32 %v310_v59, %v194_v60  ;;  %v390_v62 = vpop.f32.mrb[1].mxu1 }
 0x1b5   :  { %v198_v63 = vmax.f32 %v195_v61, 0.0 }
 0x1b7   :  { %424 = vmatmul.mubr.f32.vlgmr.msra.gmra.mrb[2].mxu0 %v198_v63 }
 0x28a   :  { %v288_v1 = vpop.f32.mrb[2].mxu0 }
 0x28b   :  { %v289_v2 = vadd.f32 %v311_v0, %v288_v1  ;;  %v425_v3 = vpop.f32.mrb[3].mxu0 }
 0x28d   :  { %481 = vtanh.f32 %v289_v2 }
 0x297   :  { %v482_v4 = vpop.eup %481 }
 0x298   :  { %293 = vst [vmem:[#allocation2] sm:$0xff] %v482_v4 }
 0x299   :  { %494 = shalt.err (!%p491_p4)
}
 0x29a   :  { %s495_s5 = scalar_lea.hbm %s698_s6, 128 }
 0x29b   :  { %p496_p5 = scmp.ne.s32.totalorder %s698_s6, %s495_s5  ;;  %p499_p6 = scmp.lt.u32.totalorder %s495_s5, %s698_s6 }
 0x29d   :  { %p501_p7 = pnand %p499_p6, %p496_p5 }
 0x29f   :  { %504 = shalt.err (!%p501_p7)
}
 0x2a0   :  { %303 = dma.vmem_to_hbm [thread:$0]  %s301_s17, 128, %s698_s6, [#allocation3]  }
 0x2a1   :  { %505 = dma.done.wait [#allocation3], 128  }
 0x2a2   :  { %506 = vsyncadd [#allocation3], 4294967168 }
 0x2a3   :  { %307 = vsyncpa [#allocation3], 1 }

</bundles_post_ra>
